<compile_context>
chip_gen: v5e
topology: v5e:2x2
jax: 0.10.0
libtpu: 0.0.40
codegen_flags: <defaults>
</compile_context>

<pallas_src>
import functools

import numpy as np
import jax
import jax.numpy as jnp
from jax.experimental import pallas as pl
from jax.experimental.pallas import tpu as pltpu


_SEG_PAD = np.int32(2 ** 30)                       # pad slot id: sorted-tail, never matches
_KEY_SENTINEL = np.int32(np.iinfo(np.int32).max)   # voxel key for invalid (dropped) points


def _round_up(x, m):
    return (x + m - 1) // m * m


# ---------------------------------------------------------------------------
# Pallas kernel: one grid step = accumulate one point tile into the output
# block of one voxel tile via a {0,1} bf16 one-hot matmul on the MXU.
# ---------------------------------------------------------------------------
def _scatter_kernel(vt_ref, pt_ref, fl_ref,        # scalar prefetch (SMEM)
                    seg_ref, feat_ref,             # inputs (VMEM tiles)
                    out_ref,                       # output tile (f32 accumulator)
                    *, n_feat, steps_per_split):
    c = pl.program_id(0)
    s = pl.program_id(1)
    g = c * steps_per_split + s
    fl = fl_ref[g]     # bit0 = first step of voxel tile, bit1 = last, bit2 = real work
    vt = vt_ref[g]     # voxel-tile index (same value the out BlockSpec uses)
    tm = out_ref.shape[0]
    tn = seg_ref.shape[1]

    @pl.when((fl & 4) != 0)
    def _accumulate():
        # Shift the [1, TN] segment ids by the scalar tile offset and compare
        # against a loop-invariant iota (cheaper than adding to a [TM,TN] iota).
        seg_local = seg_ref[...] - vt * tm                         # [1, TN] int32
        row_ids = jax.lax.broadcasted_iota(jnp.int32, (tm, tn), 0)  # [TM, TN]
        # Pure {0,1} one-hot is exact in bf16; features were pre-scaled by w in
        # the glue (trailing column = w), so one bf16 MXU matmul produces both
        # sum(w*feat) and sum(w).  Accumulation stays f32.
        onehot = (row_ids == seg_local).astype(jnp.bfloat16)       # [TM, TN]
        part = jnp.dot(onehot, feat_ref[...],
                       preferred_element_type=jnp.float32)         # [TM, Fp] f32

        # Accumulate directly into the VMEM-resident output block.
        @pl.when((fl & 1) != 0)
        def _first():
            out_ref[...] = part

        @pl.when((fl & 1) == 0)
        def _rest():
            out_ref[...] = out_ref[...] + part

    @pl.when((fl & 2) != 0)
    def _finalize():
        wsum = out_ref[:, n_feat:n_feat + 1]                        # [TM, 1] = sum(w)
        # Exact reciprocal: approx=True introduced ~3e-3 rel error (previous
        # accuracy failure); this runs only once per voxel tile.
        inv = 1.0 / (wsum + 1e-8)
        out_ref[...] = out_ref[...] * inv


def _pallas_weighted_scatter(vt_ids, pt_ids, flags, seg, feats,
                             *, n_feat, m_pad, tm, tn, num_splits,
                             steps_per_split):
    f_pad = feats.shape[1]
    L = steps_per_split
    kernel = functools.partial(_scatter_kernel, n_feat=n_feat,
                               steps_per_split=steps_per_split)
    # VMEM limit derived from the actual (double-buffered) tile footprint.
    feat_blk = tn * f_pad * 2          # bf16
    seg_blk = tn * 4                   # int32
    out_blk = tm * f_pad * 4           # f32
    vmem_limit = int(min(max(4 * (feat_blk + seg_blk + out_blk) + (2 << 20),
                             8 << 20), 64 << 20))
    return pl.pallas_call(
        kernel,
        out_shape=jax.ShapeDtypeStruct((m_pad, f_pad), jnp.float32),
        grid_spec=pltpu.PrefetchScalarGridSpec(
            num_scalar_prefetch=3,
            # Leading 'parallel' axis = disjoint voxel-tile ranges, one
            # schedule per TensorCore on v7x (harmless sequential loop on the
            # single-core v5e/v6e).  The inner axis carries the accumulator.
            grid=(num_splits, steps_per_split),
            in_specs=[
                pl.BlockSpec((1, tn), lambda c, s, vt, pt, fl: (0, pt[c * L + s])),
                pl.BlockSpec((tn, f_pad), lambda c, s, vt, pt, fl: (pt[c * L + s], 0)),
            ],
            out_specs=pl.BlockSpec((tm, f_pad),
                                   lambda c, s, vt, pt, fl: (vt[c * L + s], 0)),
        ),
        compiler_params=pltpu.CompilerParams(
            dimension_semantics=("parallel", "arbitrary"),
            vmem_limit_bytes=vmem_limit,
        ),
    )(vt_ids, pt_ids, flags, seg, feats)


# ---------------------------------------------------------------------------
# Jitted glue: voxel keys, single sort, schedule construction, coord gather.
# ---------------------------------------------------------------------------
@functools.partial(jax.jit, static_argnames=("dx", "dy", "dz", "ncols", "tm",
                                             "tn", "max_voxels", "num_splits"))
def _scatter_core(points, coors, *, dx, dy, dz, ncols, tm, tn, max_voxels,
                  num_splits):
    points = points.astype(jnp.float32)
    coors = coors.astype(jnp.int32)
    n, c = points.shape
    f = c - 1

    # ---- voxel key per point (invalid -> INT32_MAX sentinel) --------------
    if ncols == 3:
        key = (coors[:, 0] * dy + coors[:, 1]) * dx + coors[:, 2]
    else:
        key = ((coors[:, 0] * dz + coors[:, 1]) * dy + coors[:, 2]) * dx + coors[:, 3]
    valid = jnp.all(coors >= 0, axis=1)
    key = jnp.where(valid, key, _KEY_SENTINEL).astype(jnp.int32)

    # ---- ONE sort; slots from adjacent-key diffs + cumsum ------------------
    order = jnp.argsort(key).astype(jnp.int32)
    key_sorted = key[order]
    is_new = jnp.concatenate([jnp.ones((1,), jnp.bool_),
                              key_sorted[1:] != key_sorted[:-1]])
    seg_sorted = (jnp.cumsum(is_new.astype(jnp.int32)) - 1).astype(jnp.int32)
    num_voxels = jnp.sum(jnp.logical_and(is_new, key_sorted < _KEY_SENTINEL)
                         .astype(jnp.int32))

    pts_sorted = points[order]
    w_sorted = pts_sorted[:, 0]
    feat_sorted = pts_sorted[:, 1:]

    # ---- TPU-friendly padding ---------------------------------------------
    n_pad = _round_up(n, tn)
    m_pad = _round_up(max_voxels, tm)
    f_pad = _round_up(f + 1, 128)                  # +1 w-column, lane-dense

    seg = jnp.full((1, n_pad), _SEG_PAD, jnp.int32).at[0, :n].set(seg_sorted)
    # bf16 features pre-scaled by w; the trailing column carries w so the
    # matmul also produces per-voxel sum(w).
    feats = jnp.zeros((n_pad, f_pad), jnp.bfloat16)
    feats = feats.at[:n, :f].set((feat_sorted * w_sorted[:, None])
                                 .astype(jnp.bfloat16))
    feats = feats.at[:n, f].set(w_sorted.astype(jnp.bfloat16))

    # voxel coordinates: any point of a slot carries that slot's coors.
    slot_src = jnp.zeros((m_pad,), jnp.int32).at[seg_sorted].set(order, mode="drop")
    coors_out = coors[slot_src]

    # ---- flattened (voxel-tile, point-tile) schedule, one per core split ---
    nt = n_pad // tn
    mt = m_pad // tm
    mt_per = -(-mt // num_splits)
    steps_per_split = nt + mt_per                  # static per-chunk upper bound

    segs2 = seg.reshape(nt, tn)
    tile_min = segs2[:, 0]
    tile_max = segs2[:, -1]
    lo = jnp.arange(mt, dtype=jnp.int32) * tm
    hi = lo + tm
    start = jnp.searchsorted(tile_max, lo, side="left").astype(jnp.int32)
    stop = jnp.searchsorted(tile_min, hi, side="left").astype(jnp.int32)
    count = jnp.maximum(stop - start, 0).astype(jnp.int32)

    g = jnp.arange(steps_per_split, dtype=jnp.int32)
    vt_chunks, pt_chunks, fl_chunks = [], [], []
    for cs in range(num_splits):
        t0 = cs * mt_per
        t1 = min(t0 + mt_per, mt)
        ccount = count[t0:t1]
        ccum = jnp.cumsum(ccount).astype(jnp.int32)
        coff = jnp.concatenate([jnp.zeros((1,), jnp.int32), ccum])
        g_used = ccum[-1]
        is_pad = g >= g_used
        lvt = jnp.searchsorted(ccum, g, side="right").astype(jnp.int32)
        lvt = jnp.minimum(lvt, t1 - t0 - 1)
        vt = t0 + lvt
        pt = start[vt] + (g - coff[lvt])
        first = jnp.logical_and(~is_pad, g == coff[lvt])
        last = jnp.logical_and(~is_pad, g == ccum[lvt] - 1)
        # padded tail steps repeat this chunk's last real (vt, pt): same block
        # indices -> no extra DMA, writeback stays the finalized data.
        last_g = jnp.maximum(g_used - 1, 0)
        vt = jnp.where(is_pad, vt[last_g], vt)
        pt = jnp.where(is_pad, pt[last_g], pt)
        pt = jnp.clip(pt, 0, nt - 1)
        flags = (first.astype(jnp.int32)
                 | (last.astype(jnp.int32) << 1)
                 | ((~is_pad).astype(jnp.int32) << 2))
        vt_chunks.append(vt)
        pt_chunks.append(pt)
        fl_chunks.append(flags)

    vt_all = jnp.concatenate(vt_chunks)
    pt_all = jnp.concatenate(pt_chunks)
    fl_all = jnp.concatenate(fl_chunks)

    pooled = _pallas_weighted_scatter(
        vt_all, pt_all, fl_all, seg, feats,
        n_feat=f, m_pad=m_pad, tm=tm, tn=tn, num_splits=num_splits,
        steps_per_split=steps_per_split)
    voxels_padded = pooled[:, :f]                  # drop w-sum + zero-pad lanes
    return voxels_padded, coors_out.astype(jnp.int32), num_voxels


class DynamicScatterWithDistance:
    """JAX/Pallas port of det3d DynamicScatterWithDistance (forward only)."""

    def __init__(self, voxel_size, point_cloud_range, pool_method="weighted_avg",
                 max_voxels=None, tile_voxels=128, tile_points=2048,
                 num_core_splits=1):
        # TODO(synk): only 'weighted_avg' (the module default) is kernelized;
        # 'max' / 'avg' pooling variants are not implemented here.
        assert pool_method == "weighted_avg"
        self.voxel_size = voxel_size
        self.point_cloud_range = point_cloud_range
        self.pool_method = pool_method
        self.max_voxels = max_voxels
        # TM=128 default (v5e-friendly; bump to 256 on v6e/v7x only if the MXU,
        # not the VPU/vst slots, is the saturating unit).
        self.tile_voxels = tile_voxels
        # Larger point tile -> fewer grid steps per point (VMEM stays tiny).
        self.tile_points = tile_points
        # Set to 2 on v7x so each TensorCore owns half of the voxel-tile range.
        self.num_core_splits = num_core_splits

        pcr = np.asarray(point_cloud_range, np.float64)
        vs = np.asarray(voxel_size, np.float64)
        grid = np.round((pcr[3:] - pcr[:3]) / vs).astype(np.int64)
        self.dx, self.dy, self.dz = int(grid[0]), int(grid[1]), int(grid[2])

    def _scatter(self, points, coors):
        points = jnp.asarray(points, jnp.float32)
        coors = jnp.asarray(coors, jnp.int32)
        n = int(points.shape[0])
        ncols = int(coors.shape[1])

        if self.max_voxels is not None:
            max_voxels = self.max_voxels
        elif ncols == 3:
            max_voxels = self.dx * self.dy * self.dz
        else:
            max_voxels = n                       # batch count unknown statically
        max_voxels = max(1, min(int(max_voxels), n))

        tm = max(8, min(_round_up(self.tile_voxels, 8), _round_up(max_voxels, 8)))
        tn = max(128, min(_round_up(self.tile_points, 128), _round_up(n, 128)))
        m_pad = _round_up(max_voxels, tm)
        mt = m_pad // tm
        num_splits = max(1, min(int(self.num_core_splits), mt))
        mt_per = -(-mt // num_splits)
        num_splits = -(-mt // mt_per)            # guarantee non-empty chunks

        voxels_padded, coors_padded, num_vox = _scatter_core(
            points, coors, dx=self.dx, dy=self.dy, dz=self.dz,
            ncols=ncols, tm=tm, tn=tn, max_voxels=max_voxels,
            num_splits=num_splits)

        # Single host sync: dynamic output row count (TPU shapes are static).
        m_out = int(voxels_padded.shape[0])
        n_out = min(int(num_vox), m_out)
        return voxels_padded[:n_out], coors_padded[:n_out]

    def forward_single(self, points, coors):
        return self._scatter(points, coors)

    def __call__(self, points, coors):
        # 3-col coors: single sample; 4-col: batch id folded into the voxel
        # key, giving batch-major (then key-sorted) voxel ordering.
        return self._scatter(points, coors)


# ----------------------------- numpy reference -------------------------------
def _reference(points, coors, voxel_size, pcr):
    points = np.asarray(points, np.float64)
    coors = np.asarray(coors, np.int64)
    grid = np.round((np.asarray(pcr[3:]) - np.asarray(pcr[:3])) /
                    np.asarray(voxel_size)).astype(np.int64)
    dx, dy, dz = int(grid[0]), int(grid[1]), int(grid[2])
    ncols = coors.shape[1]
    if ncols == 3:
        key = (coors[:, 0] * dy + coors[:, 1]) * dx + coors[:, 2]
    else:
        key = ((coors[:, 0] * dz + coors[:, 1]) * dy + coors[:, 2]) * dx + coors[:, 3]
    valid = np.all(coors >= 0, axis=1)
    uniq = np.unique(key[valid])
    out, out_coors = [], []
    for k in uniq:
        sel = (key == k) & valid
        w = points[sel, 0]
        ft = points[sel, 1:]
        out.append((ft * w[:, None]).sum(0) / (w.sum() + 1e-8))
        if ncols == 3:
            out_coors.append([k // (dy * dx), (k // dx) % dy, k % dx])
        else:
            vol = dz * dy * dx
            r = k % vol
            out_coors.append([k // vol, r // (dy * dx), (r // dx) % dy, r % dx])
    return np.stack(out, 0), np.asarray(out_coors, np.int64)


if __name__ == "__main__":
    rng = jax.random.PRNGKey(0)
    keys = jax.random.split(rng, 10)

    voxel_size = [0.5, 0.5, 0.5]
    point_cloud_range = [0.0, 0.0, 0.0, 8.0, 8.0, 4.0]   # grid = 16 x 16 x 8
    mod = DynamicScatterWithDistance(voxel_size, point_cloud_range,
                                     pool_method="weighted_avg")

    # bf16 feature path (perf feedback): accumulation is f32 but the weighted
    # features / weights are rounded to bf16, so compare at bf16-level tolerance.
    RTOL = ATOL = 2e-2
    F = 4

    # ---- case 1: single sample, (z, y, x) coors, one invalid point --------
    N = 64
    w1 = jax.random.uniform(keys[0], (N, 1), minval=0.1, maxval=1.0)
    f1 = jax.random.normal(keys[1], (N, F))
    pts1 = jnp.concatenate([w1, f1], axis=1)                    # [N, 1 + F]
    coors1 = jax.random.randint(keys[2], (N, 3), 0, 4).astype(jnp.int32)
    coors1 = coors1.at[5].set(jnp.array([-1, -1, -1], jnp.int32))   # dropped
    v1, c1 = mod(pts1, coors1)
    v1 = jax.block_until_ready(v1)
    c1 = jax.block_until_ready(c1)
    rv1, rc1 = _reference(np.asarray(pts1), np.asarray(coors1),
                          voxel_size, point_cloud_range)
    np.testing.assert_allclose(np.asarray(v1), rv1, rtol=RTOL, atol=ATOL)
    np.testing.assert_array_equal(np.asarray(c1), rc1)

    # ---- case 2: batched, (batch, z, y, x) coors ---------------------------
    N2 = 96
    w2 = jax.random.uniform(keys[3], (N2, 1), minval=0.1, maxval=1.0)
    f2 = jax.random.normal(keys[4], (N2, F))
    pts2 = jnp.concatenate([w2, f2], axis=1)
    b2 = jax.random.randint(keys[5], (N2, 1), 0, 2)
    zyx2 = jax.random.randint(keys[6], (N2, 3), 0, 3)
    coors2 = jnp.concatenate([b2, zyx2], axis=1).astype(jnp.int32)
    v2, c2 = mod(pts2, coors2)
    v2 = jax.block_until_ready(v2)
    c2 = jax.block_until_ready(c2)
    rv2, rc2 = _reference(np.asarray(pts2), np.asarray(coors2),
                          voxel_size, point_cloud_range)
    np.testing.assert_allclose(np.asarray(v2), rv2, rtol=RTOL, atol=ATOL)
    np.testing.assert_array_equal(np.asarray(c2), rc2)

    # ---- case 3: small voxel tiles + 2-way core split (v7x path) ----------
    mod_split = DynamicScatterWithDistance(voxel_size, point_cloud_range,
                                           pool_method="weighted_avg",
                                           tile_voxels=8, tile_points=128,
                                           num_core_splits=2)
    N3 = 96
    w3 = jax.random.uniform(keys[7], (N3, 1), minval=0.1, maxval=1.0)
    f3 = jax.random.normal(keys[8], (N3, F))
    pts3 = jnp.concatenate([w3, f3], axis=1)
    b3 = jax.random.randint(keys[9], (N3, 1), 0, 2)
    zyx3 = jax.random.randint(jax.random.fold_in(rng, 99), (N3, 3), 0, 4)
    coors3 = jnp.concatenate([b3, zyx3], axis=1).astype(jnp.int32)
    v3, c3 = mod_split(pts3, coors3)
    v3 = jax.block_until_ready(v3)
    c3 = jax.block_until_ready(c3)
    rv3, rc3 = _reference(np.asarray(pts3), np.asarray(coors3),
                          voxel_size, point_cloud_range)
    np.testing.assert_allclose(np.asarray(v3), rv3, rtol=RTOL, atol=ATOL)
    np.testing.assert_array_equal(np.asarray(c3), rc3)

    print("KERNEL_OK")
</pallas_src>

<mosaic_0001>
module attributes {stable_mosaic.version = 11 : i64} {
  func.func @_scatter_kernel(%arg0: i32, %arg1: i32, %arg2: memref<2xi32, #tpu.memory_space<smem>>, %arg3: memref<2xi32, #tpu.memory_space<smem>>, %arg4: memref<2xi32, #tpu.memory_space<smem>>, %arg5: memref<1x128xi32, #tpu.memory_space<vmem>>, %arg6: memref<128x128xbf16, #tpu.memory_space<vmem>>, %arg7: memref<64x128xf32, #tpu.memory_space<vmem>>) attributes {dimension_semantics = [#tpu.dimension_semantics<parallel>, #tpu.dimension_semantics<arbitrary>], iteration_bounds = array<i64: 1, 2>, scalar_prefetch = 3 : i64, scratch_operands = 0 : i64, tpu.core_type = #tpu.core_type<tc>, window_params = [{transform_indices = @transform_0, window_bounds = array<i64: 1, 128>}, {transform_indices = @transform_1, window_bounds = array<i64: 128, 128>}, {transform_indices = @transform_2, window_bounds = array<i64: 64, 128>}]} {
    %c2_i32 = arith.constant 2 : i32
    %0 = arith.muli %arg0, %c2_i32 : i32
    %1 = arith.addi %0, %arg1 : i32
    %2 = arith.index_cast %1 : i32 to index
    %3 = memref.load %arg4[%2] : memref<2xi32, #tpu.memory_space<smem>>
    %4 = arith.index_cast %1 : i32 to index
    %5 = memref.load %arg2[%4] : memref<2xi32, #tpu.memory_space<smem>>
    %c4_i32 = arith.constant 4 : i32
    %6 = arith.andi %3, %c4_i32 : i32
    %c0_i32 = arith.constant 0 : i32
    %7 = arith.cmpi ne, %6, %c0_i32 : i32
    %8 = arith.extui %7 : i1 to i32
    %c0_i32_0 = arith.constant 0 : i32
    %9 = arith.cmpi ne, %8, %c0_i32_0 : i32
    scf.if %9 {
      %c0 = arith.constant 0 : index
      %c0_4 = arith.constant 0 : index
      %14 = vector.load %arg5[%c0, %c0_4] : memref<1x128xi32, #tpu.memory_space<vmem>>, vector<1x128xi32>
      %c64_i32 = arith.constant 64 : i32
      %15 = arith.muli %5, %c64_i32 : i32
      %16 = vector.broadcast %15 : i32 to vector<1x128xi32>
      %17 = arith.subi %14, %16 : vector<1x128xi32>
      %18 = tpu.iota {dimensions = array<i32: 0>} : vector<64x128xi32>
      %19 = vector.broadcast %17 : vector<1x128xi32> to vector<64x128xi32>
      %20 = arith.cmpi eq, %18, %19 : vector<64x128xi32>
      %21 = arith.extui %20 : vector<64x128xi1> to vector<64x128xi32>
      %22 = arith.sitofp %21 : vector<64x128xi32> to vector<64x128xf32>
      %23 = arith.truncf %22 : vector<64x128xf32> to vector<64x128xbf16>
      %c0_5 = arith.constant 0 : index
      %c0_6 = arith.constant 0 : index
      %24 = vector.load %arg6[%c0_5, %c0_6] : memref<128x128xbf16, #tpu.memory_space<vmem>>, vector<128x128xbf16>
      %cst = arith.constant dense<0.000000e+00> : vector<64x128xf32>
      %25 = tpu.matmul %23, %24, %cst {dimension_numbers = #tpu.dot_dimension_numbers<[1], [0], [0], [1], [0, 0, 1, 1], [], []>} : vector<64x128xbf16>, vector<128x128xbf16>, vector<64x128xf32> -> vector<64x128xf32>
      %c1_i32 = arith.constant 1 : i32
      %26 = arith.andi %3, %c1_i32 : i32
      %c0_i32_7 = arith.constant 0 : i32
      %27 = arith.cmpi ne, %26, %c0_i32_7 : i32
      %28 = arith.extui %27 : i1 to i32
      %c0_i32_8 = arith.constant 0 : i32
      %29 = arith.cmpi ne, %28, %c0_i32_8 : i32
      scf.if %29 {
        %c0_12 = arith.constant 0 : index
        %c0_13 = arith.constant 0 : index
        %34 = vector.load %arg7[%c0_12, %c0_13] : memref<64x128xf32, #tpu.memory_space<vmem>>, vector<64x128xf32>
        tpu.vector_store %arg7[%c0_12, %c0_13], %25 {strides = array<i32>} : memref<64x128xf32, #tpu.memory_space<vmem>>, vector<64x128xf32>,
      } else {
      }
      %c1_i32_9 = arith.constant 1 : i32
      %30 = arith.andi %3, %c1_i32_9 : i32
      %c0_i32_10 = arith.constant 0 : i32
      %31 = arith.cmpi eq, %30, %c0_i32_10 : i32
      %32 = arith.extui %31 : i1 to i32
      %c0_i32_11 = arith.constant 0 : i32
      %33 = arith.cmpi ne, %32, %c0_i32_11 : i32
      scf.if %33 {
        %c0_12 = arith.constant 0 : index
        %c0_13 = arith.constant 0 : index
        %34 = vector.load %arg7[%c0_12, %c0_13] : memref<64x128xf32, #tpu.memory_space<vmem>>, vector<64x128xf32>
        %35 = arith.addf %34, %25 : vector<64x128xf32>
        %c0_14 = arith.constant 0 : index
        %c0_15 = arith.constant 0 : index
        %36 = vector.load %arg7[%c0_14, %c0_15] : memref<64x128xf32, #tpu.memory_space<vmem>>, vector<64x128xf32>
        tpu.vector_store %arg7[%c0_14, %c0_15], %35 {strides = array<i32>} : memref<64x128xf32, #tpu.memory_space<vmem>>, vector<64x128xf32>,
      } else {
      }
    } else {
    }
    %c2_i32_1 = arith.constant 2 : i32
    %10 = arith.andi %3, %c2_i32_1 : i32
    %c0_i32_2 = arith.constant 0 : i32
    %11 = arith.cmpi ne, %10, %c0_i32_2 : i32
    %12 = arith.extui %11 : i1 to i32
    %c0_i32_3 = arith.constant 0 : i32
    %13 = arith.cmpi ne, %12, %c0_i32_3 : i32
    scf.if %13 {
      %c0 = arith.constant 0 : index
      %c4 = arith.constant 4 : index
      %14 = vector.load %arg7[%c0, %c4] : memref<64x128xf32, #tpu.memory_space<vmem>>, vector<64x1xf32>
      %cst = arith.constant 9.99999993E-9 : f32
      %15 = vector.broadcast %cst : f32 to vector<64x1xf32>
      %16 = arith.addf %14, %15 : vector<64x1xf32>
      %cst_4 = arith.constant 1.000000e+00 : f32
      %17 = vector.broadcast %cst_4 : f32 to vector<64x1xf32>
      %18 = arith.divf %17, %16 : vector<64x1xf32>
      %c0_5 = arith.constant 0 : index
      %c0_6 = arith.constant 0 : index
      %19 = vector.load %arg7[%c0_5, %c0_6] : memref<64x128xf32, #tpu.memory_space<vmem>>, vector<64x128xf32>
      %20 = vector.broadcast %18 : vector<64x1xf32> to vector<64x128xf32>
      %21 = arith.mulf %19, %20 : vector<64x128xf32>
      %c0_7 = arith.constant 0 : index
      %c0_8 = arith.constant 0 : index
      %22 = vector.load %arg7[%c0_7, %c0_8] : memref<64x128xf32, #tpu.memory_space<vmem>>, vector<64x128xf32>
      tpu.vector_store %arg7[%c0_7, %c0_8], %21 {strides = array<i32>} : memref<64x128xf32, #tpu.memory_space<vmem>>, vector<64x128xf32>,
    } else {
    }
    return
  }
  func.func @transform_0(%arg0: i32, %arg1: i32, %arg2: memref<2xi32, #tpu.memory_space<smem>>, %arg3: memref<2xi32, #tpu.memory_space<smem>>, %arg4: memref<2xi32, #tpu.memory_space<smem>>) -> (i32, i32) {
    %c2_i32 = arith.constant 2 : i32
    %0 = arith.muli %arg0, %c2_i32 : i32
    %1 = arith.addi %0, %arg1 : i32
    %2 = arith.index_cast %1 : i32 to index
    %3 = memref.load %arg3[%2] : memref<2xi32, #tpu.memory_space<smem>>
    %c0_i32 = arith.constant 0 : i32
    %c0_i32_0 = arith.constant 0 : i32
    return %c0_i32, %3 : i32, i32
  }
  func.func @transform_1(%arg0: i32, %arg1: i32, %arg2: memref<2xi32, #tpu.memory_space<smem>>, %arg3: memref<2xi32, #tpu.memory_space<smem>>, %arg4: memref<2xi32, #tpu.memory_space<smem>>) -> (i32, i32) {
    %c2_i32 = arith.constant 2 : i32
    %0 = arith.muli %arg0, %c2_i32 : i32
    %1 = arith.addi %0, %arg1 : i32
    %2 = arith.index_cast %1 : i32 to index
    %3 = memref.load %arg3[%2] : memref<2xi32, #tpu.memory_space<smem>>
    %c0_i32 = arith.constant 0 : i32
    %c0_i32_0 = arith.constant 0 : i32
    return %3, %c0_i32 : i32, i32
  }
  func.func @transform_2(%arg0: i32, %arg1: i32, %arg2: memref<2xi32, #tpu.memory_space<smem>>, %arg3: memref<2xi32, #tpu.memory_space<smem>>, %arg4: memref<2xi32, #tpu.memory_space<smem>>) -> (i32, i32) {
    %c2_i32 = arith.constant 2 : i32
    %0 = arith.muli %arg0, %c2_i32 : i32
    %1 = arith.addi %0, %arg1 : i32
    %2 = arith.index_cast %1 : i32 to index
    %3 = memref.load %arg2[%2] : memref<2xi32, #tpu.memory_space<smem>>
    %c0_i32 = arith.constant 0 : i32
    %c0_i32_0 = arith.constant 0 : i32
    return %3, %c0_i32 : i32, i32
  }
}

</mosaic_0001>

<bundles_post_ra>
// kernel: _scatter_core.1
= control target key start
LH: loop header
LB: loop body
LE: loop exit
PB: predicated region body
PF: predicated region fallthrough
CT: control target
= control target key end

     0   :  { %s922_s24 = smov [#allocation3]   ;;  %s923_s25 = smov [#allocation4]   ;;  %s1238_s0 = inlined_call_operand.vmem [shape: s32[2], index: 0, kind: input, shape index: {}]   ;;  %s1239_s3 = inlined_call_operand.vmem [shape: s32[1,128], index: 3, kind: input, shape index: {}]   ;;  %s1240_s4 = inlined_call_operand.vmem [shape: bf16[128,128], index: 4, kind: input, shape index: {}]   ;;  %s1241_s5 = inlined_call_operand.vmem [shape: f32[64,128], index: 5, kind: output, shape index: {}]   ;;  %s1242_s1 = inlined_call_operand.vmem [shape: s32[2], index: 1, kind: input, shape index: {}]   ;;  %s1243_s2 = inlined_call_operand.vmem [shape: s32[2], index: 2, kind: input, shape index: {}]  }
   0x1   :  { %s11_s20 = sshll.u32 %s1238_s0, 4  ;;  %s16_s23 = sshll.u32 %s1242_s1, 4  ;;  %s12_s20 = int_to_ptr.vmem [resolvable:$true] %s11_s20  ;;  %s17_s23 = int_to_ptr.vmem [resolvable:$true] %s16_s23 }
   0x2   :  { %14 = dma.vmem_to_smem %s12_s20, 16, %s922_s24, [#allocation2] }
   0x3   :  { %19 = dma.vmem_to_smem %s17_s23, 16, %s923_s25, [#allocation2] }
   0x4   :  { %s21_s28 = sshll.u32 %s1243_s2, 4  ;;  %s924_s29 = smov [#allocation5]   ;;  %s22_s28 = int_to_ptr.vmem [resolvable:$true] %s21_s28 }
   0x5   :  { %24 = dma.vmem_to_smem %s22_s28, 16, %s924_s29, [#allocation2] }
   0x6   :  { %908 = dma.done.wait [#allocation2], 48 }
   0x7   :  { %909 = vsyncadd [#allocation2], 4294967248 }
   0x8   :  { %27 = sfence }
   0x9   :  { %s966_s0 = smov 0   ;;  %s968_s30 = smov 0  }
   0xa   :  { %s970_s1 = smov 0  }
   0xb LB: > { %s42_s2 = sadd.s32 1, %s916_s30  ;;  %p720_p0 = scmp.ge.s32.totalorder %s920_s1, 1  ;;  %s920_s1 = sphi %s970_s1, %s33_s1   ;;  %s916_s30 = sphi %s968_s30, %s1267_s30   ;;  %s912_s0 = sphi %s966_s0, %s1266_s0  }
   0xc   : > { %p43_p1 = scmp.ge.s32.totalorder %s42_s2, 2  ;;  %p184_p2 = scmp.lt.s32.totalorder %s920_s1, 3 }
   0xe   : > { %s1269_s2 = smov (%p43_p1, %s42_s2), 0  ;;  %p185_p3 = pnand %p720_p0, %p184_p2 }
   0xf   : > { %s220_s6 = sld [smem:[#allocation4 + %s912_s0]] (!%p185_p3) }
  0x10   : > { %188 = sbr.rel (%p185_p3) target bundleno = 397 (0x18d), region = 28  ;;  %s229_s7 = sld [smem:[#allocation4 + %s912_s0]] (!%p185_p3) }
  0x11   : > { %s241_s8 = sld [smem:[#allocation3 + %s912_s0]] (!%p185_p3) }
  0x12   : > { %s984_s9 = sld [smem:[#allocation3 + %s912_s0]] (!%p185_p3) }
  0x13   : > { %s986_s10 = sld [smem:[#allocation5 + %s912_s0]] (!%p185_p3) }
  0x15   : > { %p221_p4 = scmp.lt.s32.totalorder %s220_s6, 0 }
  0x16   : > { %s721_s11 = sshll.u32 %s229_s7, 4 }
  0x17   : > { %s1271_s6 = smov (!%p221_p4, %s220_s6), 0  ;;  %p231_p5 = scmp.lt.s32.totalorder %s721_s11, 15 }
  0x18   : > { %s723_s12 = sshll.u32 %s241_s8, 3  ;;  %s223_s15 = scalar_lea.vmem %s1239_s3, %s1271_s6 }
  0x19   : > { %p243_p6 = scmp.lt.s32.totalorder %s723_s12, 7  ;;  %s1273_s11 = smov (!%p231_p5, %s721_s11), 15 }
  0x1a   : > { %s722_s16 = sshll.u32 %s1273_s11, 2  ;;  %s255_s17 = sand.u32 4, %s986_s10 }
  0x1b   : > { %s1275_s12 = smov (!%p243_p6, %s723_s12), 7  ;;  %s998_s20 = scalar_lea.vmem %s1240_s4, %s722_s16 }
  0x1c   : > { %s724_s21 = sshll.u32 %s1275_s12, 3  ;;  %p725_p7 = scmp.eq.s32.totalorder %s255_s17, 0 }
  0x1d   : > { %s1003_s24 = scalar_lea.vmem %s1241_s5, %s724_s21  ;;  %s726_s25 = sshll.u32 (!%p725_p7), %s984_s9, 6 }
  0x1e   : > { %259 = sbr.rel (%p725_p7) target bundleno = 234 (0xea), region = 32  ;;  %s395_s28 = sand.u32 (!%p725_p7), 1, %s986_s10 }
  0x1f   : > { %p775_p8 = scmp.eq.s32.totalorder (!%p725_p7), %s395_s28, 0 }
  0x23   : > { %v787_v0 = vld [vmem:[%s998_s20 + $0x38] sm:$0xff]  ;;  %v786_v1 = vld [vmem:[%s998_s20 + $0x30] sm:$0xff]  ;;  %v785_v2 = vld [vmem:[%s998_s20 + $0x28] sm:$0xff]  ;;  %v264_v4 = vlaneseq  ;;  %v262_v7 = vstv %s726_s25  ;;  %v925_v21 = vmov 1.0|1.0  }
  0x24   : > { %366 = vmatpush.bf16.msra.mxu0 %v787_v0  ;;  %788 = vmatpush.bf16.msra.mxu1 %v787_v0  ;;  %v784_v3 = vld [vmem:[%s998_s20 + $0x20] sm:$0xff]  ;;  %v783_v5 = vld [vmem:[%s998_s20 + $0x18] sm:$0xff]  ;;  %v782_v10 = vld [vmem:[%s998_s20 + $0x10] sm:$0xff] }
  0x25   : > { %789 = vmatpush.bf16.msra.mxu2 %v787_v0  ;;  %790 = vmatpush.bf16.msra.mxu3 %v787_v0  ;;  %v260_v6 = vld [vmem:[%s223_s15] sm:$0x1]  ;;  %v265_v9 = vshrl.u32 %v264_v4, 7  ;;  %v781_v13 = vld [vmem:[%s998_s20 + $0x8] sm:$0xff] }
  0x26   : > { %v263_v8 = vsub.s32 %v260_v6, %v262_v7  ;;  %v780_v20 = vld [vmem:[%s998_s20] sm:$0xff] }
  0x27   : > { %v266_v11 = vadd.s32 8, %v265_v9  ;;  %v267_v14 = vadd.s32 16, %v265_v9  ;;  %v268_v15 = vadd.s32 24, %v265_v9  ;;  %v269_v16 = vadd.s32 32, %v265_v9 }
  0x28   : > { %367 = vmatpush.bf16.msra.mxu0 %v786_v1  ;;  %791 = vmatpush.bf16.msra.mxu1 %v786_v1  ;;  %v273_v12 = vperm.slane %v263_v8, 0  ;;  %v270_v17 = vadd.s32 40, %v265_v9  ;;  %v271_v18 = vadd.s32 48, %v265_v9  ;;  %v272_v19 = vadd.s32 56, %v265_v9 }
  0x29   : > { %792 = vmatpush.bf16.msra.mxu2 %v786_v1  ;;  %793 = vmatpush.bf16.msra.mxu3 %v786_v1 }
  0x2a   : > { %vm274_vm0 = vcmp.eq.s32.totalorder %v265_v9, %v273_v12  ;;  %vm275_vm1 = vcmp.eq.s32.totalorder %v266_v11, %v273_v12  ;;  %vm276_vm2 = vcmp.eq.s32.totalorder %v267_v14, %v273_v12  ;;  %vm277_vm3 = vcmp.eq.s32.totalorder %v268_v15, %v273_v12 }
  0x2b   : > { %vm278_vm4 = vcmp.eq.s32.totalorder %v269_v16, %v273_v12  ;;  %vm279_vm5 = vcmp.eq.s32.totalorder %v270_v17, %v273_v12  ;;  %vm767_vm6 = vmpackc.low %vm275_vm1, %vm274_vm0  ;;  %vm280_vm7 = vcmp.eq.s32.totalorder %v271_v18, %v273_v12  ;;  %vm281_vm8 = vcmp.eq.s32.totalorder %v272_v19, %v273_v12 }
  0x2c   : > { %368 = vmatpush.bf16.msra.mxu0 %v785_v2  ;;  %794 = vmatpush.bf16.msra.mxu1 %v785_v2  ;;  %vm769_vm9 = vmpackc.low %vm277_vm3, %vm276_vm2 }
  0x2d   : > { %795 = vmatpush.bf16.msra.mxu2 %v785_v2  ;;  %796 = vmatpush.bf16.msra.mxu3 %v785_v2  ;;  %vm771_vm10 = vmpackc.low %vm279_vm5, %vm278_vm4 }
  0x2e   : > { %vm773_vm11 = vmpackc.low %vm281_vm8, %vm280_vm7 }
  0x30   : > { %369 = vmatpush.bf16.msra.mxu0 %v784_v3  ;;  %797 = vmatpush.bf16.msra.mxu1 %v784_v3 }
  0x31   : > { %798 = vmatpush.bf16.msra.mxu2 %v784_v3  ;;  %799 = vmatpush.bf16.msra.mxu3 %v784_v3 }
  0x34   : > { %370 = vmatpush.bf16.msra.mxu0 %v783_v5  ;;  %800 = vmatpush.bf16.msra.mxu1 %v783_v5 }
  0x35   : > { %801 = vmatpush.bf16.msra.mxu2 %v783_v5  ;;  %802 = vmatpush.bf16.msra.mxu3 %v783_v5 }
  0x38   : > { %371 = vmatpush.bf16.msra.mxu0 %v782_v10  ;;  %803 = vmatpush.bf16.msra.mxu1 %v782_v10 }
  0x39   : > { %804 = vmatpush.bf16.msra.mxu2 %v782_v10  ;;  %805 = vmatpush.bf16.msra.mxu3 %v782_v10 }
  0x3c   : > { %372 = vmatpush.bf16.msra.mxu0 %v781_v13  ;;  %806 = vmatpush.bf16.msra.mxu1 %v781_v13 }
  0x3d   : > { %807 = vmatpush.bf16.msra.mxu2 %v781_v13  ;;  %808 = vmatpush.bf16.msra.mxu3 %v781_v13 }
  0x40   : > { %373 = vmatpush.bf16.msra.mxu0 %v780_v20  ;;  %809 = vmatpush.bf16.msra.mxu1 %v780_v20 }
  0x41   : > { %810 = vmatpush.bf16.msra.mxu2 %v780_v20  ;;  %811 = vmatpush.bf16.msra.mxu3 %v780_v20 }
  0x43   : > { %768 = vmatmul.msk.bf16.vlgmr.msra.gmra.mxu0 %vm767_vm6, %v925_v21  ;;  %770 = vmatmul.msk.bf16.vlgmr.msra.gmra.mxu1 %vm769_vm9, %v925_v21 }
  0x44   : > { %772 = vmatmul.msk.bf16.vlgmr.msra.gmra.mxu2 %vm771_vm10, %v925_v21  ;;  %774 = vmatmul.msk.bf16.vlgmr.msra.gmra.mxu3 %vm773_vm11, %v925_v21 }
  0xc0   : > { %v375_v22 = vpop.f32.mrf.mxu0  ;;  %v380_v23 = vpop.f32.mrf.mxu1 }
  0xc7   : > { %v385_v24 = vpop.f32.mrf.mxu2  ;;  %v390_v25 = vpop.f32.mrf.mxu3 }
  0xc8   : > { %v377_v26 = vpop.f32.mrf.mxu0  ;;  %v382_v27 = vpop.f32.mrf.mxu1 }
  0xcb   : > { %399 = sbr.rel (%p775_p8) target bundleno = 216 (0xd8), region = 36 }
  0xcf   : > { %v387_v28 = vpop.f32.mrf.mxu2  ;;  %v392_v29 = vpop.f32.mrf.mxu3 }
  0xd0   : > { %400 = vst [vmem:[%s1003_s24] sm:$0xff] %v375_v22 }
  0xd1   : > { %401 = vst [vmem:[%s1003_s24 + $0x8] sm:$0xff] %v377_v26 }
  0xd2   : > { %402 = vst [vmem:[%s1003_s24 + $0x10] sm:$0xff] %v380_v23 }
  0xd3   : > { %403 = vst [vmem:[%s1003_s24 + $0x18] sm:$0xff] %v382_v27 }
  0xd4   : > { %404 = vst [vmem:[%s1003_s24 + $0x20] sm:$0xff] %v385_v24 }
  0xd5   : > { %405 = vst [vmem:[%s1003_s24 + $0x28] sm:$0xff] %v387_v28 }
  0xd6   : > { %406 = vst [vmem:[%s1003_s24 + $0x30] sm:$0xff] %v390_v25 }
  0xd7   : > { %407 = vst [vmem:[%s1003_s24 + $0x38] sm:$0xff] %v392_v29 }
  0xd8 PF: > { %p776_p9 = scmp.ne.s32.totalorder %s395_s28, 0 }
  0xda   : > { %411 = sbr.rel (%p776_p9) target bundleno = 234 (0xea), region = 40 }
  0xdf   : > { %v412_v30 = vld [vmem:[%s1003_s24] sm:$0xff]  ;;  %v413_v31 = vld [vmem:[%s1003_s24 + $0x8] sm:$0xff]  ;;  %v414_v32 = vld [vmem:[%s1003_s24 + $0x10] sm:$0xff] }
  0xe0   : > { %v415_v33 = vld [vmem:[%s1003_s24 + $0x18] sm:$0xff]  ;;  %v416_v34 = vld [vmem:[%s1003_s24 + $0x20] sm:$0xff]  ;;  %v417_v35 = vld [vmem:[%s1003_s24 + $0x28] sm:$0xff]  ;;  %v420_v36 = vadd.f32 %v412_v30, %v375_v22  ;;  %v421_v37 = vadd.f32 %v413_v31, %v377_v26  ;;  %v422_v38 = vadd.f32 %v414_v32, %v380_v23 }
  0xe1   : > { %v418_v39 = vld [vmem:[%s1003_s24 + $0x30] sm:$0xff]  ;;  %v419_v40 = vld [vmem:[%s1003_s24 + $0x38] sm:$0xff]  ;;  %v423_v41 = vadd.f32 %v415_v33, %v382_v27  ;;  %v424_v42 = vadd.f32 %v416_v34, %v385_v24  ;;  %v425_v43 = vadd.f32 %v417_v35, %v387_v28 }
  0xe2   : > { %428 = vst [vmem:[%s1003_s24] sm:$0xff] %v420_v36  ;;  %v426_v44 = vadd.f32 %v418_v39, %v390_v25  ;;  %v427_v45 = vadd.f32 %v419_v40, %v392_v29 }
  0xe3   : > { %429 = vst [vmem:[%s1003_s24 + $0x8] sm:$0xff] %v421_v37 }
  0xe4   : > { %430 = vst [vmem:[%s1003_s24 + $0x10] sm:$0xff] %v422_v38 }
  0xe5   : > { %431 = vst [vmem:[%s1003_s24 + $0x18] sm:$0xff] %v423_v41 }
  0xe6   : > { %432 = vst [vmem:[%s1003_s24 + $0x20] sm:$0xff] %v424_v42 }
  0xe7   : > { %433 = vst [vmem:[%s1003_s24 + $0x28] sm:$0xff] %v425_v43 }
  0xe8   : > { %434 = vst [vmem:[%s1003_s24 + $0x30] sm:$0xff] %v426_v44 }
  0xe9   : > { %435 = vst [vmem:[%s1003_s24 + $0x38] sm:$0xff] %v427_v45 }
  0xea PF: > { %s436_s29 = sand.u32 2, %s986_s10 }
  0xeb   : > { %p777_p10 = scmp.eq.s32.totalorder %s436_s29, 0 }
  0xed   : > { %440 = sbr.rel (%p777_p10) target bundleno = 397 (0x18d), region = 44 }
  0xf2   : > { %v1046_v46 = vld [vmem:[%s1003_s24 + $0x10] sm:$0xff]  ;;  %v1049_v47 = vld [vmem:[%s1003_s24] sm:$0xff]  ;;  %v1052_v48 = vld [vmem:[%s1003_s24 + $0x18] sm:$0xff]  ;;  %v926_v49 = vmov 4  }
  0xf3   : > { %842 = vset.pattern.permute.xlu1 %v926_v49  ;;  %841 = vset.pattern.permute.xlu0 %v926_v49  ;;  %v451_v50 = vadd.f32 1e-08, %v1046_v46  ;;  %v449_v51 = vadd.f32 1e-08, %v1049_v47  ;;  %v452_v52 = vadd.f32 1e-08, %v1052_v48 }
  0xf4   : > { %843 = vset.pattern.permute.xlu2 %v926_v49  ;;  %v1058_v53 = vld [vmem:[%s1003_s24 + $0x8] sm:$0xff]  ;;  %v1061_v54 = vld [vmem:[%s1003_s24 + $0x38] sm:$0xff]  ;;  %v1064_v56 = vld [vmem:[%s1003_s24 + $0x30] sm:$0xff] }
  0xf5   : > { %844 = vrcp.f32 %v451_v50  ;;  %v496_v55 = vand.u32 2147483647, %v451_v50  ;;  %v498_v57 = vand.u32 2147483648, %v451_v50  ;;  %v1067_v58 = vadd.f32 1e-08, %v1058_v53  ;;  %v1073_v61 = vld [vmem:[%s1003_s24 + $0x20] sm:$0xff] }
  0xf6   : > { %846 = vrcp.f32 %v449_v51  ;;  %v1070_v59 = vadd.f32 1e-08, %v1061_v54  ;;  %vm492_vm12 = vweird.f32 %v451_v50  ;;  %vm462_vm13 = vweird.f32 %v449_v51  ;;  %v1095_v13 = vld [vmem:[%s1003_s24 + $0x28] sm:$0xff] }
  0xf7   : > { %848 = vrcp.f32 %v452_v52  ;;  %v466_v60 = vand.u32 2147483647, %v449_v51  ;;  %vm1075_vm14 = vcmp.eq.f32.partialorder %v496_v55, 8.507059e+37  ;;  %v468_v0 = vand.u32 2147483648, %v449_v51 }
  0xf8   : > { %850 = vrcp.f32 %v1067_v58  ;;  %v1081_v1 = vadd.f32 1e-08, %v1064_v56  ;;  %v511_v4 = vand.u32 2147483647, %v452_v52  ;;  %v513_v5 = vand.u32 2147483648, %v452_v52 }
  0xf9   : > { %852 = vrcp.f32 %v1070_v59  ;;  %v499_v7 = vor.u32 1.1754944e-38, %v498_v57  ;;  %vm507_vm15 = vweird.f32 %v452_v52  ;;  %v1087_v9 = vadd.f32 1e-08, %v1073_v61 }
  0xfa   : > { %vm1089_vm1 = vcmp.eq.f32.partialorder %v466_v60, 8.507059e+37  ;;  %v469_v15 = vor.u32 1.1754944e-38, %v468_v0  ;;  %854 = vrcp.f32 %v1081_v1  ;;  %vm1098_vm3 = vcmp.eq.f32.partialorder %v511_v4, 8.507059e+37 }
  0xfb   : > { %v845_v62 = vpop.eup %844  ;;  %v514_v19 = vor.u32 1.1754944e-38, %v513_v5  ;;  %856 = vrcp.f32 %v1087_v9  ;;  %v1110_v23 = vadd.f32 1e-08, %v1095_v13  ;;  %v481_v29 = vand.u32 2147483647, %v1067_v58 }
  0xfc   : > { %v847_v2 = vpop.eup %846  ;;  %v488_v3 = vmul.f32 %v845_v62, %v451_v50  ;;  %vm493_vm0 = vweird.f32 %v845_v62  ;;  %vm477_vm7 = vweird.f32 %v1067_v58  ;;  %v483_v31 = vand.u32 2147483648, %v1067_v58 }
  0xfd   : > { %v1084_v6 = vpop.eup %848  ;;  %v458_v8 = vmul.f32 %v847_v2, %v449_v51  ;;  %vm463_vm2 = vweird.f32 %v847_v2  ;;  %vm1103_vm4 = vmor %vm492_vm12, %vm493_vm0  ;;  %vm567_vm10 = vweird.f32 %v1070_v59  ;;  %vm1146_vm11 = vcmp.eq.f32.partialorder %v481_v29, 8.507059e+37 }
  0xfe   : > { %v489_v10 = vsub.f32 1.0, %v488_v3  ;;  %v503_v12 = vmul.f32 %v1084_v6, %v452_v52  ;;  %v851_v20 = vpop.eup %850  ;;  %vm508_vm5 = vweird.f32 %v1084_v6  ;;  %vm1116_vm6 = vmor %vm462_vm13, %vm463_vm2  ;;  %v484_v51 = vor.u32 1.1754944e-38, %v483_v31 }
  0xff   : > { %v459_v14 = vsub.f32 1.0, %v458_v8  ;;  %v1112_v24 = vpop.eup %852  ;;  %v473_v28 = vmul.f32 %v851_v20, %v1067_v58  ;;  %vm1133_vm8 = vmor %vm507_vm15, %vm508_vm5  ;;  %vm478_vm9 = vweird.f32 %v851_v20  ;;  %v571_v52 = vand.u32 2147483647, %v1070_v59 }
 0x100   : > { %v490_v16 = vmul.f32 %v845_v62, %v489_v10  ;;  %v504_v17 = vsub.f32 1.0, %v503_v12  ;;  %v563_v32 = vmul.f32 %v1112_v24, %v1070_v59  ;;  %v1137_v37 = vpop.eup %854  ;;  %vm1157_vm12 = vmor %vm477_vm7, %vm478_vm9  ;;  %vm568_vm13 = vweird.f32 %v1112_v24 }
 0x101   : > { %v460_v22 = vmul.f32 %v847_v2, %v459_v14  ;;  %v474_v36 = vsub.f32 1.0, %v473_v28  ;;  %v548_v44 = vmul.f32 %v1137_v37, %v1081_v1  ;;  %v857_v45 = vpop.eup %856  ;;  %v526_v63 = vand.u32 2147483647, %v1087_v9  ;;  %vm1184_vm2 = vmor %vm567_vm10, %vm568_vm13 }
 0x102   : > { %v491_v25 = vadd.f32 %v845_v62, %v490_v16  ;;  %v505_v27 = vmul.f32 %v1084_v6, %v504_v17  ;;  %v564_v40 = vsub.f32 1.0, %v563_v32  ;;  %v528_v58 = vand.u32 2147483648, %v1087_v9 }
 0x103   : > { %v461_v30 = vadd.f32 %v847_v2, %v460_v22  ;;  %v475_v42 = vmul.f32 %v851_v20, %v474_v36  ;;  %v549_v60 = vsub.f32 1.0, %v548_v44  ;;  %858 = vrcp.f32 %v1110_v23 }
 0x104   : > { %v495_v33 = vsel %vm1103_vm4, %v845_v62, %v491_v25  ;;  %v506_v34 = vadd.f32 %v1084_v6, %v505_v27  ;;  %v565_v57 = vmul.f32 %v1112_v24, %v564_v40  ;;  %v518_v62 = vmul.f32 %v857_v45, %v1087_v9 }
 0x105   : > { %v500_v38 = vsel %vm1075_vm14, %v499_v7, %v495_v33  ;;  %v465_v39 = vsel %vm1116_vm6, %v847_v2, %v461_v30  ;;  %v476_v55 = vadd.f32 %v851_v20, %v475_v42  ;;  %vm522_vm14 = vweird.f32 %v1087_v9 }
 0x106   : > { %589 = vperm.xlu1 %842, %v500_v38   ;;  %v470_v41 = vsel %vm1089_vm1, %v469_v15, %v465_v39  ;;  %v510_v49 = vsel %vm1133_vm8, %v1084_v6, %v506_v34  ;;  %v550_v2 = vmul.f32 %v1137_v37, %v549_v60  ;;  %v519_v3 = vsub.f32 1.0, %v518_v62 }
 0x107   : > { %579 = vperm.xlu0 %841, %v470_v41   ;;  %v480_v0 = vsel %vm1157_vm12, %v851_v20, %v476_v55  ;;  %vm523_vm15 = vweird.f32 %v857_v45  ;;  %v515_v4 = vsel %vm1098_vm3, %v514_v19, %v510_v49  ;;  %v573_v5 = vand.u32 2147483648, %v1070_v59 }
 0x108   : > { %vm552_vm0 = vweird.f32 %v1081_v1  ;;  %vm553_vm1 = vweird.f32 %v1137_v37  ;;  %v485_v6 = vsel %vm1146_vm11, %v484_v51, %v480_v0  ;;  %v566_v7 = vadd.f32 %v1112_v24, %v565_v57  ;;  %vm1193_vm3 = vmor %vm522_vm14, %vm523_vm15 }
 0x109   : > { %v558_v10 = vand.u32 2147483648, %v1081_v1  ;;  %v520_v11 = vmul.f32 %v857_v45, %v519_v3  ;;  %v551_v12 = vadd.f32 %v1137_v37, %v550_v2  ;;  %v556_v14 = vand.u32 2147483647, %v1081_v1  ;;  %vm1197_vm4 = vmor %vm552_vm0, %vm553_vm1  ;;  %v859_v18 = vpop.eup %858 }
 0x10a   : > { %v529_v16 = vor.u32 1.1754944e-38, %v528_v58  ;;  %vm527_vm5 = vcmp.eq.f32.partialorder %v526_v63, 8.507059e+37  ;;  %vm572_vm6 = vcmp.eq.f32.partialorder %v571_v52, 8.507059e+37  ;;  %v574_v19 = vor.u32 1.1754944e-38, %v573_v5 }
 0x10b   : > { %v521_v17 = vadd.f32 %v857_v45, %v520_v11  ;;  %v570_v1 = vsel %vm1184_vm2, %v1112_v24, %v566_v7  ;;  %v559_v9 = vor.u32 1.1754944e-38, %v558_v10  ;;  %v533_v21 = vmul.f32 %v859_v18, %v1110_v23 }
 0x10c   : > { %v555_v22 = vsel %vm1197_vm4, %v1137_v37, %v551_v12  ;;  %vm557_vm7 = vcmp.eq.f32.partialorder %v556_v14, 8.507059e+37  ;;  %v543_v26 = vand.u32 2147483648, %v1110_v23  ;;  %vm537_vm8 = vweird.f32 %v1110_v23 }
 0x10d   : > { %v525_v20 = vsel %vm1193_vm3, %v857_v45, %v521_v17  ;;  %v534_v27 = vsub.f32 1.0, %v533_v21  ;;  %vm538_vm9 = vweird.f32 %v859_v18  ;;  %v541_v24 = vand.u32 2147483647, %v1110_v23 }
 0x10e   : > { %594 = vperm.xlu1 %842, %v515_v4   ;;  %v530_v25 = vsel %vm527_vm5, %v529_v16, %v525_v20  ;;  %v575_v28 = vsel %vm572_vm6, %v574_v19, %v570_v1  ;;  %v560_v29 = vsel %vm557_vm7, %v559_v9, %v555_v22  ;;  %vm539_vm10 = vmor %vm537_vm8, %vm538_vm9  ;;  %v544_v31 = vor.u32 1.1754944e-38, %v543_v26 }
 0x10f   : > { %584 = vperm.xlu0 %841, %v485_v6   ;;  %599 = vperm.xlu2 %843, %v530_v25   ;;  %v535_v30 = vmul.f32 %v859_v18, %v534_v27  ;;  %vm542_vm11 = vcmp.eq.f32.partialorder %v541_v24, 8.507059e+37 }
 0x111   : > { %v536_v32 = vadd.f32 %v859_v18, %v535_v30 }
 0x113   : > { %v540_v33 = vsel %vm539_vm10, %v859_v18, %v536_v32 }
 0x114   : > { %v545_v34 = vsel %vm542_vm11, %v544_v31, %v540_v33 }
 0x116   : > { %614 = vperm.xlu1 %842, %v575_v28  }
 0x117   : > { %609 = vperm.xlu0 %841, %v560_v29   ;;  %604 = vperm.xlu2 %843, %v545_v34  }
 0x169   : > { %v600_v36 = vpop.permute.xlu2 %599 }
 0x16a   : > { %v621_v44 = vmul.f32 %v600_v36, %v1073_v61 }
 0x16c   : > { %629 = vst [vmem:[%s1003_s24 + $0x20] sm:$0xff] %v621_v44 }
 0x171   : > { %v605_v42 = vpop.permute.xlu2 %604 }
 0x172   : > { %v622_v45 = vmul.f32 %v605_v42, %v1095_v13 }
 0x174   : > { %630 = vst [vmem:[%s1003_s24 + $0x28] sm:$0xff] %v622_v45 }
 0x178   : > { %v590_v35 = vpop.permute.xlu1 %589 }
 0x179   : > { %v580_v23 = vpop.permute.xlu0 %579  ;;  %v619_v41 = vmul.f32 %v590_v35, %v1046_v46 }
 0x17a   : > { %v617_v37 = vmul.f32 %v580_v23, %v1049_v47 }
 0x17b   : > { %627 = vst [vmem:[%s1003_s24 + $0x10] sm:$0xff] %v619_v41 }
 0x17c   : > { %625 = vst [vmem:[%s1003_s24] sm:$0xff] %v617_v37 }
 0x180   : > { %v595_v38 = vpop.permute.xlu1 %594 }
 0x181   : > { %v585_v39 = vpop.permute.xlu0 %584  ;;  %v620_v43 = vmul.f32 %v595_v38, %v1052_v48 }
 0x182   : > { %v618_v40 = vmul.f32 %v585_v39, %v1058_v53 }
 0x183   : > { %628 = vst [vmem:[%s1003_s24 + $0x18] sm:$0xff] %v620_v43 }
 0x184   : > { %626 = vst [vmem:[%s1003_s24 + $0x8] sm:$0xff] %v618_v40 }
 0x188   : > { %v615_v47 = vpop.permute.xlu1 %614 }
 0x189   : > { %v624_v49 = vmul.f32 %v615_v47, %v1061_v54  ;;  %v610_v50 = vpop.permute.xlu0 %609 }
 0x18a   : > { %v623_v53 = vmul.f32 %v610_v50, %v1064_v56 }
 0x18b   : > { %632 = vst [vmem:[%s1003_s24 + $0x38] sm:$0xff] %v624_v49 }
 0x18c   : > { %631 = vst [vmem:[%s1003_s24 + $0x30] sm:$0xff] %v623_v53 }
 0x18d PF: > { %s33_s1 = sadd.s32 1, %s920_s1   ;;  %s1266_s0 = smov %s916_s30 }
 0x18e   : > { %p30_p11 = scmp.ge.s32.totalorder %s33_s1, 4   ;;  %s1267_s30 = smov %s1269_s2 }
 0x190   :  { %32 = sbr.rel (!%p30_p11) target bundleno = 11 (0xb), region = 77 }

</bundles_post_ra>
